<compile_context>
chip_gen: v6e
topology: v6e:2x2x1
jax: 0.10.0
libtpu: 0.0.40
codegen_flags: <defaults>
</compile_context>

<pallas_src>
import jax
import jax.numpy as jnp
from jax.experimental import pallas as pl
from jax.experimental.pallas import tpu as pltpu

LEAKY_RATE = 0.1


def _leaky(x):
    return jnp.where(x > 0, x, LEAKY_RATE * x)


# ----------------------------------------------------------------------------
# Glue: KNN (data-dependent top-k; stays in plain JAX/XLA)
# ----------------------------------------------------------------------------
def square_distance(src, dst):
    dist = -2.0 * jnp.einsum("bnc,bmc->bnm", src, dst)
    dist = dist + jnp.sum(src**2, -1)[:, :, None]
    dist = dist + jnp.sum(dst**2, -1)[:, None, :]
    return dist


def knn_point(nsample, xyz, new_xyz):
    sqrdists = square_distance(new_xyz, xyz)
    _, idx = jax.lax.top_k(-sqrdists, nsample)  # smallest distances
    return idx


def index_points_group(points, idx):
    # points: [B, N, C], idx: [B, S, K] -> [B, S, K, C]
    return jax.vmap(lambda p, i: p[i])(points, idx)


def group_inputs(pc1, pc2, feat1, feat2, nsample):
    # Used only by the pure-JAX reference below.
    xyz1 = jnp.transpose(pc1, (0, 2, 1))
    xyz2 = jnp.transpose(pc2, (0, 2, 1))
    p1 = jnp.transpose(feat1, (0, 2, 1))
    p2 = jnp.transpose(feat2, (0, 2, 1))
    knn_idx = knn_point(nsample, xyz2, xyz1)                      # [B, N1, K]
    neighbor_xyz = index_points_group(xyz2, knn_idx)              # [B, N1, K, 3]
    direction_xyz = neighbor_xyz - xyz1[:, :, None, :]
    grouped_p2 = index_points_group(p2, knn_idx)                  # [B, N1, K, D2]
    B, N1, K, _ = grouped_p2.shape
    grouped_p1 = jnp.broadcast_to(p1[:, :, None, :], (B, N1, K, p1.shape[-1]))
    return jnp.concatenate([grouped_p1, grouped_p2, direction_xyz], axis=-1)


# ----------------------------------------------------------------------------
# Pallas kernel: fused KNN gather + 2-layer 1x1-conv MLP (leaky) + max over K
# ----------------------------------------------------------------------------
def _nocross_kernel(q_ref, idx_ref, nbr_ref, w1_ref, b1_ref, w2_ref, b2_ref,
                    out_ref):
    # q_ref  : (1, Dq, TN)   query-side channels (feat1 ++ xyz1), points on lanes
    # idx_ref: (1, K, TN)    int32 neighbour indices into the N2 axis
    # nbr_ref: (1, C1, N2)   conv1-projected neighbour features (whole pc2)
    # w1_ref : (C1, Dq), b1_ref: (C1, 1)      query-side conv1 weight / bias
    # w2_ref : (C2, C1), b2_ref: (C2, 1)      conv2 weight / bias
    # out_ref: (1, C2, TN)   lane-dense output tile
    _, K, TN = idx_ref.shape
    N2 = nbr_ref.shape[2]
    C2 = out_ref.shape[1]

    q = q_ref[0]                                  # (Dq, TN)
    nbr = nbr_ref[0]                              # (C1, N2)
    w2 = w2_ref[...]

    # conv1 query-side partial result: shared by all K neighbours (once / tile).
    base = jnp.dot(w1_ref[...], q, preferred_element_type=jnp.float32) + b1_ref[...]

    # Hoist loop-invariant broadcasts out of the K loop (JAX does not CSE them).
    b2 = jnp.broadcast_to(b2_ref[...], (C2, TN))
    row_ids = jax.lax.broadcasted_iota(jnp.int32, (N2, TN), 0)

    acc = None
    for k in range(K):                            # K is small & static: unroll
        idx_k = idx_ref[0, k:k + 1, :]            # (1, TN) per-k ref load
        # Fused gather: one-hot (N2, TN) selection matrix -> MXU matmul.
        sel = jnp.where(row_ids == idx_k, 1.0, 0.0)
        h = base + jnp.dot(nbr, sel, preferred_element_type=jnp.float32)
        h = jnp.where(h > 0, h, LEAKY_RATE * h)   # leaky conv1
        h = jnp.dot(w2, h, preferred_element_type=jnp.float32) + b2
        h = jnp.where(h > 0, h, LEAKY_RATE * h)   # leaky conv2
        acc = h if acc is None else jnp.maximum(acc, h)
    out_ref[0] = acc.astype(out_ref.dtype)


def _choose_tile_n(n1, n2, batch):
    """Lane tile over the N1 point dim."""
    if n1 <= 128:
        return n1                 # single full-width tile (block == full dim)
    # Prefer 512 (~85% of HBM roofline vs 63% at 256), keep the transient
    # (N2, TN) one-hot small, and keep >= 2 parallel grid steps (v7x has 2 TCs).
    cands = [t for t in (512, 256, 128) if n2 * t * 4 <= 8 * 2**20] or [128]
    for tn in cands:
        if tn <= n1 and batch * pl.cdiv(n1, tn) >= 2:
            return tn
    return cands[-1]


def _vmem_limit_bytes(tn, n2, dq, k, c1, c2):
    # Double-buffered blocks + weights + transient one-hot / activations, with
    # headroom, clamped so it fits v7x's 64 MiB physical VMEM.
    blocks = (dq + k + c2) * tn * 4 + c1 * n2 * 4
    weights = (c1 * (dq + 1) + c2 * (c1 + 1)) * 4
    transient = (n2 + 2 * c1 + 2 * c2) * tn * 4
    est = 2 * (blocks + weights) + transient
    return int(min(48 * 2**20, max(16 * 2**20, 2 * est)))


def nocross_forward(pc1, pc2, feat1, feat2, params, nsample):
    """NoCrossLayer forward. Returns [B, Cout, N1] (PyTorch layout)."""
    B, _, N1 = pc1.shape
    N2 = pc2.shape[2]
    D1 = feat1.shape[1]
    D2 = feat2.shape[1]
    w1, b1 = params["w1"], params["b1"]
    w2, b2 = params["w2"], params["b2"]
    C1, C2 = w1.shape[0], w2.shape[0]
    K = nsample
    assert w1.shape[1] == D1 + D2 + 3

    # ---- KNN (data-dependent top_k) stays in plain JAX glue ----
    xyz1 = jnp.transpose(pc1, (0, 2, 1))
    xyz2 = jnp.transpose(pc2, (0, 2, 1))
    knn_idx = knn_point(K, xyz2, xyz1)                            # [B, N1, K]
    idx = jnp.transpose(knn_idx, (0, 2, 1)).astype(jnp.int32)     # [B, K, N1]

    # ---- exploit conv1 linearity: split W1 over [feat1 | feat2 | dir] ----
    w1_p1, w1_p2, w1_dir = w1[:, :D1], w1[:, D1:D1 + D2], w1[:, D1 + D2:]
    # query-side input/weight: base = W1_p1@feat1 - W1_dir@xyz1 + b1 (in kernel)
    q = jnp.concatenate([feat1, pc1], axis=1)                     # [B, D1+3, N1]
    w1_q = jnp.concatenate([w1_p1, -w1_dir], axis=1)              # (C1, D1+3)
    # neighbour-side projection (no K, no N1 factor): [B, C1, N2]
    nbr = (jnp.einsum("oc,bcn->bon", w1_p2, feat2)
           + jnp.einsum("oc,bcn->bon", w1_dir, pc2))

    # ---- tile N1 on lanes; pad only the small, pre-gather inputs ----
    Dq = D1 + 3
    TN = _choose_tile_n(N1, N2, B)
    n_tiles = pl.cdiv(N1, TN)
    N_pad = n_tiles * TN
    if N_pad != N1:
        q = jnp.pad(q, ((0, 0), (0, 0), (0, N_pad - N1)))
        idx = jnp.pad(idx, ((0, 0), (0, 0), (0, N_pad - N1)))     # 0 is a valid idx

    out = pl.pallas_call(
        _nocross_kernel,
        out_shape=jax.ShapeDtypeStruct((B, C2, N_pad), jnp.float32),
        grid=(B, n_tiles),
        in_specs=[
            pl.BlockSpec((1, Dq, TN), lambda b, i: (b, 0, i)),
            pl.BlockSpec((1, K, TN), lambda b, i: (b, 0, i)),
            pl.BlockSpec((1, C1, N2), lambda b, i: (b, 0, 0)),
            pl.BlockSpec((C1, Dq), lambda b, i: (0, 0)),
            pl.BlockSpec((C1, 1), lambda b, i: (0, 0)),
            pl.BlockSpec((C2, C1), lambda b, i: (0, 0)),
            pl.BlockSpec((C2, 1), lambda b, i: (0, 0)),
        ],
        out_specs=pl.BlockSpec((1, C2, TN), lambda b, i: (b, 0, i)),
        compiler_params=pltpu.CompilerParams(
            dimension_semantics=("parallel", "parallel"),
            vmem_limit_bytes=_vmem_limit_bytes(TN, N2, Dq, K, C1, C2)),
    )(q, idx, nbr, w1_q, b1[:, None], w2, b2[:, None])

    return out[:, :, :N1]                         # drop zero-pad tail (keep!)


# ----------------------------------------------------------------------------
# Pure-JAX reference mirroring the PyTorch forward op-by-op (for validation)
# ----------------------------------------------------------------------------
def reference_forward(pc1, pc2, feat1, feat2, params, nsample):
    new_points = group_inputs(pc1, pc2, feat1, feat2, nsample)    # [B, N1, K, Cin]
    h = jnp.transpose(new_points, (0, 3, 2, 1))                   # [B, Cin, K, N1]
    for w, b in ((params["w1"], params["b1"]), (params["w2"], params["b2"])):
        h = jnp.einsum("oc,bckn->bokn", w, h) + b[None, :, None, None]
        h = _leaky(h)                                             # leaky 1x1 conv
    return jnp.max(h, axis=2)                                     # max-pool over K


# ----------------------------------------------------------------------------
def make_params(key, in_channel, mlp1):
    last = in_channel * 2 + 3                  # matches PyTorch: in_channel*2 + 3
    c1, c2 = mlp1
    ks = jax.random.split(key, 4)
    return {
        "w1": 0.3 * jax.random.normal(ks[0], (c1, last), jnp.float32),
        "b1": 0.1 * jax.random.normal(ks[1], (c1,), jnp.float32),
        "w2": 0.3 * jax.random.normal(ks[2], (c2, c1), jnp.float32),
        "b2": 0.1 * jax.random.normal(ks[3], (c2,), jnp.float32),
    }


if __name__ == "__main__":
    configs = [
        # (B, N1, N2, nsample, in_channel, mlp1)
        (2, 16, 16, 8, 5, (16, 32)),    # tiny: single full-width tile per batch
        (2, 160, 48, 4, 4, (16, 32)),   # exercises N-tiling + tail padding
    ]
    key = jax.random.PRNGKey(0)
    for (B, N1, N2, nsample, in_channel, mlp1) in configs:
        key, k1, k2, k3, k4, kp = jax.random.split(key, 6)
        pc1 = jax.random.normal(k1, (B, 3, N1), jnp.float32)
        pc2 = jax.random.normal(k2, (B, 3, N2), jnp.float32)
        feat1 = jax.random.normal(k3, (B, in_channel, N1), jnp.float32)
        feat2 = jax.random.normal(k4, (B, in_channel, N2), jnp.float32)
        params = make_params(kp, in_channel, mlp1)

        out = jax.block_until_ready(
            nocross_forward(pc1, pc2, feat1, feat2, params, nsample))
        ref = jax.block_until_ready(
            reference_forward(pc1, pc2, feat1, feat2, params, nsample))

        assert out.shape == (B, mlp1[-1], N1)
        # Tolerance covers MXU/XLA f32-matmul precision differences between the
        # split-weight kernel path and the single-concat reference path.
        if not jnp.allclose(out, ref, atol=2e-2, rtol=2e-2):
            err = float(jnp.max(jnp.abs(out - ref)))
            raise RuntimeError(
                f"Pallas kernel output mismatch vs reference (max abs err {err:.3e})")

    print("KERNEL_OK")
</pallas_src>

<mosaic_0001>
module attributes {stable_mosaic.version = 11 : i64} {
  func.func @_nocross_kernel(%arg0: i32, %arg1: i32, %arg2: memref<1x8x16xf32, #tpu.memory_space<vmem>>, %arg3: memref<1x8x16xi32, #tpu.memory_space<vmem>>, %arg4: memref<1x16x16xf32, #tpu.memory_space<vmem>>, %arg5: memref<16x8xf32, #tpu.memory_space<vmem>>, %arg6: memref<16x1xf32, #tpu.memory_space<vmem>>, %arg7: memref<32x16xf32, #tpu.memory_space<vmem>>, %arg8: memref<32x1xf32, #tpu.memory_space<vmem>>, %arg9: memref<1x32x16xf32, #tpu.memory_space<vmem>>) attributes {dimension_semantics = [#tpu.dimension_semantics<parallel>, #tpu.dimension_semantics<parallel>], iteration_bounds = array<i64: 2, 1>, scalar_prefetch = 0 : i64, scratch_operands = 0 : i64, tpu.core_type = #tpu.core_type<tc>, window_params = [{transform_indices = @transform_0, window_bounds = array<i64: 1, 8, 16>}, {transform_indices = @transform_1, window_bounds = array<i64: 1, 8, 16>}, {transform_indices = @transform_2, window_bounds = array<i64: 1, 16, 16>}, {pipeline_mode = #tpu.pipeline_mode<synchronous>, transform_indices = @transform_3, window_bounds = array<i64: 16, 8>}, {pipeline_mode = #tpu.pipeline_mode<synchronous>, transform_indices = @transform_4, window_bounds = array<i64: 16, 1>}, {pipeline_mode = #tpu.pipeline_mode<synchronous>, transform_indices = @transform_5, window_bounds = array<i64: 32, 16>}, {pipeline_mode = #tpu.pipeline_mode<synchronous>, transform_indices = @transform_6, window_bounds = array<i64: 32, 1>}, {transform_indices = @transform_7, window_bounds = array<i64: 1, 32, 16>}]} {
    %c0 = arith.constant 0 : index
    %c0_0 = arith.constant 0 : index
    %c0_1 = arith.constant 0 : index
    %0 = vector.load %arg2[%c0, %c0_0, %c0_1] : memref<1x8x16xf32, #tpu.memory_space<vmem>>, vector<1x8x16xf32>
    %1 = vector.shape_cast %0 : vector<1x8x16xf32> to vector<8x16xf32>
    %c0_2 = arith.constant 0 : index
    %c0_3 = arith.constant 0 : index
    %c0_4 = arith.constant 0 : index
    %2 = vector.load %arg4[%c0_2, %c0_3, %c0_4] : memref<1x16x16xf32, #tpu.memory_space<vmem>>, vector<1x16x16xf32>
    %3 = vector.shape_cast %2 : vector<1x16x16xf32> to vector<16x16xf32>
    %c0_5 = arith.constant 0 : index
    %c0_6 = arith.constant 0 : index
    %4 = vector.load %arg7[%c0_5, %c0_6] : memref<32x16xf32, #tpu.memory_space<vmem>>, vector<32x16xf32>
    %c0_7 = arith.constant 0 : index
    %c0_8 = arith.constant 0 : index
    %5 = vector.load %arg5[%c0_7, %c0_8] : memref<16x8xf32, #tpu.memory_space<vmem>>, vector<16x8xf32>
    %cst = arith.constant dense<0.000000e+00> : vector<16x16xf32>
    %6 = tpu.matmul %5, %1, %cst {dimension_numbers = #tpu.dot_dimension_numbers<[1], [0], [0], [1], [0, 0, 1, 1], [], []>} : vector<16x8xf32>, vector<8x16xf32>, vector<16x16xf32> -> vector<16x16xf32>
    %c0_9 = arith.constant 0 : index
    %c0_10 = arith.constant 0 : index
    %7 = vector.load %arg6[%c0_9, %c0_10] : memref<16x1xf32, #tpu.memory_space<vmem>>, vector<16x1xf32>
    %8 = vector.broadcast %7 : vector<16x1xf32> to vector<16x16xf32>
    %9 = arith.addf %6, %8 : vector<16x16xf32>
    %c0_11 = arith.constant 0 : index
    %c0_12 = arith.constant 0 : index
    %10 = vector.load %arg8[%c0_11, %c0_12] : memref<32x1xf32, #tpu.memory_space<vmem>>, vector<32x1xf32>
    %11 = vector.shape_cast %10 : vector<32x1xf32> to vector<32x1xf32>
    %12 = vector.broadcast %11 : vector<32x1xf32> to vector<32x16xf32>
    %13 = tpu.iota {dimensions = array<i32: 0>} : vector<16x16xi32>
    %c0_13 = arith.constant 0 : index
    %c0_14 = arith.constant 0 : index
    %c0_15 = arith.constant 0 : index
    %14 = vector.load %arg3[%c0_13, %c0_14, %c0_15] : memref<1x8x16xi32, #tpu.memory_space<vmem>>, vector<1x1x16xi32>
    %15 = vector.shape_cast %14 : vector<1x1x16xi32> to vector<1x16xi32>
    %16 = vector.broadcast %15 : vector<1x16xi32> to vector<16x16xi32>
    %17 = arith.cmpi eq, %13, %16 : vector<16x16xi32>
    %cst_16 = arith.constant 1.000000e+00 : f32
    %cst_17 = arith.constant 0.000000e+00 : f32
    %18 = vector.broadcast %cst_16 : f32 to vector<16x16xf32>
    %19 = vector.broadcast %cst_17 : f32 to vector<16x16xf32>
    %20 = arith.select %17, %18, %19 : vector<16x16xi1>, vector<16x16xf32>
    %cst_18 = arith.constant dense<0.000000e+00> : vector<16x16xf32>
    %21 = tpu.matmul %3, %20, %cst_18 {dimension_numbers = #tpu.dot_dimension_numbers<[1], [0], [0], [1], [0, 0, 1, 1], [], []>} : vector<16x16xf32>, vector<16x16xf32>, vector<16x16xf32> -> vector<16x16xf32>
    %22 = arith.addf %9, %21 : vector<16x16xf32>
    %cst_19 = arith.constant 0.000000e+00 : f32
    %23 = vector.broadcast %cst_19 : f32 to vector<16x16xf32>
    %24 = arith.cmpf ogt, %22, %23 : vector<16x16xf32>
    %cst_20 = arith.constant 1.000000e-01 : f32
    %25 = vector.broadcast %cst_20 : f32 to vector<16x16xf32>
    %26 = arith.mulf %25, %22 : vector<16x16xf32>
    %27 = arith.select %24, %22, %26 : vector<16x16xi1>, vector<16x16xf32>
    %cst_21 = arith.constant dense<0.000000e+00> : vector<32x16xf32>
    %28 = tpu.matmul %4, %27, %cst_21 {dimension_numbers = #tpu.dot_dimension_numbers<[1], [0], [0], [1], [0, 0, 1, 1], [], []>} : vector<32x16xf32>, vector<16x16xf32>, vector<32x16xf32> -> vector<32x16xf32>
    %29 = arith.addf %28, %12 : vector<32x16xf32>
    %cst_22 = arith.constant 0.000000e+00 : f32
    %30 = vector.broadcast %cst_22 : f32 to vector<32x16xf32>
    %31 = arith.cmpf ogt, %29, %30 : vector<32x16xf32>
    %cst_23 = arith.constant 1.000000e-01 : f32
    %32 = vector.broadcast %cst_23 : f32 to vector<32x16xf32>
    %33 = arith.mulf %32, %29 : vector<32x16xf32>
    %34 = arith.select %31, %29, %33 : vector<32x16xi1>, vector<32x16xf32>
    %c0_24 = arith.constant 0 : index
    %c1 = arith.constant 1 : index
    %c0_25 = arith.constant 0 : index
    %35 = vector.load %arg3[%c0_24, %c1, %c0_25] : memref<1x8x16xi32, #tpu.memory_space<vmem>>, vector<1x1x16xi32>
    %36 = vector.shape_cast %35 : vector<1x1x16xi32> to vector<1x16xi32>
    %37 = vector.broadcast %36 : vector<1x16xi32> to vector<16x16xi32>
    %38 = arith.cmpi eq, %13, %37 : vector<16x16xi32>
    %cst_26 = arith.constant 1.000000e+00 : f32
    %cst_27 = arith.constant 0.000000e+00 : f32
    %39 = vector.broadcast %cst_26 : f32 to vector<16x16xf32>
    %40 = vector.broadcast %cst_27 : f32 to vector<16x16xf32>
    %41 = arith.select %38, %39, %40 : vector<16x16xi1>, vector<16x16xf32>
    %cst_28 = arith.constant dense<0.000000e+00> : vector<16x16xf32>
    %42 = tpu.matmul %3, %41, %cst_28 {dimension_numbers = #tpu.dot_dimension_numbers<[1], [0], [0], [1], [0, 0, 1, 1], [], []>} : vector<16x16xf32>, vector<16x16xf32>, vector<16x16xf32> -> vector<16x16xf32>
    %43 = arith.addf %9, %42 : vector<16x16xf32>
    %cst_29 = arith.constant 0.000000e+00 : f32
    %44 = vector.broadcast %cst_29 : f32 to vector<16x16xf32>
    %45 = arith.cmpf ogt, %43, %44 : vector<16x16xf32>
    %cst_30 = arith.constant 1.000000e-01 : f32
    %46 = vector.broadcast %cst_30 : f32 to vector<16x16xf32>
    %47 = arith.mulf %46, %43 : vector<16x16xf32>
    %48 = arith.select %45, %43, %47 : vector<16x16xi1>, vector<16x16xf32>
    %cst_31 = arith.constant dense<0.000000e+00> : vector<32x16xf32>
    %49 = tpu.matmul %4, %48, %cst_31 {dimension_numbers = #tpu.dot_dimension_numbers<[1], [0], [0], [1], [0, 0, 1, 1], [], []>} : vector<32x16xf32>, vector<16x16xf32>, vector<32x16xf32> -> vector<32x16xf32>
    %50 = arith.addf %49, %12 : vector<32x16xf32>
    %cst_32 = arith.constant 0.000000e+00 : f32
    %51 = vector.broadcast %cst_32 : f32 to vector<32x16xf32>
    %52 = arith.cmpf ogt, %50, %51 : vector<32x16xf32>
    %cst_33 = arith.constant 1.000000e-01 : f32
    %53 = vector.broadcast %cst_33 : f32 to vector<32x16xf32>
    %54 = arith.mulf %53, %50 : vector<32x16xf32>
    %55 = arith.select %52, %50, %54 : vector<32x16xi1>, vector<32x16xf32>
    %56 = arith.maximumf %34, %55 : vector<32x16xf32>
    %c0_34 = arith.constant 0 : index
    %c2 = arith.constant 2 : index
    %c0_35 = arith.constant 0 : index
    %57 = vector.load %arg3[%c0_34, %c2, %c0_35] : memref<1x8x16xi32, #tpu.memory_space<vmem>>, vector<1x1x16xi32>
    %58 = vector.shape_cast %57 : vector<1x1x16xi32> to vector<1x16xi32>
    %59 = vector.broadcast %58 : vector<1x16xi32> to vector<16x16xi32>
    %60 = arith.cmpi eq, %13, %59 : vector<16x16xi32>
    %cst_36 = arith.constant 1.000000e+00 : f32
    %cst_37 = arith.constant 0.000000e+00 : f32
    %61 = vector.broadcast %cst_36 : f32 to vector<16x16xf32>
    %62 = vector.broadcast %cst_37 : f32 to vector<16x16xf32>
    %63 = arith.select %60, %61, %62 : vector<16x16xi1>, vector<16x16xf32>
    %cst_38 = arith.constant dense<0.000000e+00> : vector<16x16xf32>
    %64 = tpu.matmul %3, %63, %cst_38 {dimension_numbers = #tpu.dot_dimension_numbers<[1], [0], [0], [1], [0, 0, 1, 1], [], []>} : vector<16x16xf32>, vector<16x16xf32>, vector<16x16xf32> -> vector<16x16xf32>
    %65 = arith.addf %9, %64 : vector<16x16xf32>
    %cst_39 = arith.constant 0.000000e+00 : f32
    %66 = vector.broadcast %cst_39 : f32 to vector<16x16xf32>
    %67 = arith.cmpf ogt, %65, %66 : vector<16x16xf32>
    %cst_40 = arith.constant 1.000000e-01 : f32
    %68 = vector.broadcast %cst_40 : f32 to vector<16x16xf32>
    %69 = arith.mulf %68, %65 : vector<16x16xf32>
    %70 = arith.select %67, %65, %69 : vector<16x16xi1>, vector<16x16xf32>
    %cst_41 = arith.constant dense<0.000000e+00> : vector<32x16xf32>
    %71 = tpu.matmul %4, %70, %cst_41 {dimension_numbers = #tpu.dot_dimension_numbers<[1], [0], [0], [1], [0, 0, 1, 1], [], []>} : vector<32x16xf32>, vector<16x16xf32>, vector<32x16xf32> -> vector<32x16xf32>
    %72 = arith.addf %71, %12 : vector<32x16xf32>
    %cst_42 = arith.constant 0.000000e+00 : f32
    %73 = vector.broadcast %cst_42 : f32 to vector<32x16xf32>
    %74 = arith.cmpf ogt, %72, %73 : vector<32x16xf32>
    %cst_43 = arith.constant 1.000000e-01 : f32
    %75 = vector.broadcast %cst_43 : f32 to vector<32x16xf32>
    %76 = arith.mulf %75, %72 : vector<32x16xf32>
    %77 = arith.select %74, %72, %76 : vector<32x16xi1>, vector<32x16xf32>
    %78 = arith.maximumf %56, %77 : vector<32x16xf32>
    %c0_44 = arith.constant 0 : index
    %c3 = arith.constant 3 : index
    %c0_45 = arith.constant 0 : index
    %79 = vector.load %arg3[%c0_44, %c3, %c0_45] : memref<1x8x16xi32, #tpu.memory_space<vmem>>, vector<1x1x16xi32>
    %80 = vector.shape_cast %79 : vector<1x1x16xi32> to vector<1x16xi32>
    %81 = vector.broadcast %80 : vector<1x16xi32> to vector<16x16xi32>
    %82 = arith.cmpi eq, %13, %81 : vector<16x16xi32>
    %cst_46 = arith.constant 1.000000e+00 : f32
    %cst_47 = arith.constant 0.000000e+00 : f32
    %83 = vector.broadcast %cst_46 : f32 to vector<16x16xf32>
    %84 = vector.broadcast %cst_47 : f32 to vector<16x16xf32>
    %85 = arith.select %82, %83, %84 : vector<16x16xi1>, vector<16x16xf32>
    %cst_48 = arith.constant dense<0.000000e+00> : vector<16x16xf32>
    %86 = tpu.matmul %3, %85, %cst_48 {dimension_numbers = #tpu.dot_dimension_numbers<[1], [0], [0], [1], [0, 0, 1, 1], [], []>} : vector<16x16xf32>, vector<16x16xf32>, vector<16x16xf32> -> vector<16x16xf32>
    %87 = arith.addf %9, %86 : vector<16x16xf32>
    %cst_49 = arith.constant 0.000000e+00 : f32
    %88 = vector.broadcast %cst_49 : f32 to vector<16x16xf32>
    %89 = arith.cmpf ogt, %87, %88 : vector<16x16xf32>
    %cst_50 = arith.constant 1.000000e-01 : f32
    %90 = vector.broadcast %cst_50 : f32 to vector<16x16xf32>
    %91 = arith.mulf %90, %87 : vector<16x16xf32>
    %92 = arith.select %89, %87, %91 : vector<16x16xi1>, vector<16x16xf32>
    %cst_51 = arith.constant dense<0.000000e+00> : vector<32x16xf32>
    %93 = tpu.matmul %4, %92, %cst_51 {dimension_numbers = #tpu.dot_dimension_numbers<[1], [0], [0], [1], [0, 0, 1, 1], [], []>} : vector<32x16xf32>, vector<16x16xf32>, vector<32x16xf32> -> vector<32x16xf32>
    %94 = arith.addf %93, %12 : vector<32x16xf32>
    %cst_52 = arith.constant 0.000000e+00 : f32
    %95 = vector.broadcast %cst_52 : f32 to vector<32x16xf32>
    %96 = arith.cmpf ogt, %94, %95 : vector<32x16xf32>
    %cst_53 = arith.constant 1.000000e-01 : f32
    %97 = vector.broadcast %cst_53 : f32 to vector<32x16xf32>
    %98 = arith.mulf %97, %94 : vector<32x16xf32>
    %99 = arith.select %96, %94, %98 : vector<32x16xi1>, vector<32x16xf32>
    %100 = arith.maximumf %78, %99 : vector<32x16xf32>
    %c0_54 = arith.constant 0 : index
    %c4 = arith.constant 4 : index
    %c0_55 = arith.constant 0 : index
    %101 = vector.load %arg3[%c0_54, %c4, %c0_55] : memref<1x8x16xi32, #tpu.memory_space<vmem>>, vector<1x1x16xi32>
    %102 = vector.shape_cast %101 : vector<1x1x16xi32> to vector<1x16xi32>
    %103 = vector.broadcast %102 : vector<1x16xi32> to vector<16x16xi32>
    %104 = arith.cmpi eq, %13, %103 : vector<16x16xi32>
    %cst_56 = arith.constant 1.000000e+00 : f32
    %cst_57 = arith.constant 0.000000e+00 : f32
    %105 = vector.broadcast %cst_56 : f32 to vector<16x16xf32>
    %106 = vector.broadcast %cst_57 : f32 to vector<16x16xf32>
    %107 = arith.select %104, %105, %106 : vector<16x16xi1>, vector<16x16xf32>
    %cst_58 = arith.constant dense<0.000000e+00> : vector<16x16xf32>
    %108 = tpu.matmul %3, %107, %cst_58 {dimension_numbers = #tpu.dot_dimension_numbers<[1], [0], [0], [1], [0, 0, 1, 1], [], []>} : vector<16x16xf32>, vector<16x16xf32>, vector<16x16xf32> -> vector<16x16xf32>
    %109 = arith.addf %9, %108 : vector<16x16xf32>
    %cst_59 = arith.constant 0.000000e+00 : f32
    %110 = vector.broadcast %cst_59 : f32 to vector<16x16xf32>
    %111 = arith.cmpf ogt, %109, %110 : vector<16x16xf32>
    %cst_60 = arith.constant 1.000000e-01 : f32
    %112 = vector.broadcast %cst_60 : f32 to vector<16x16xf32>
    %113 = arith.mulf %112, %109 : vector<16x16xf32>
    %114 = arith.select %111, %109, %113 : vector<16x16xi1>, vector<16x16xf32>
    %cst_61 = arith.constant dense<0.000000e+00> : vector<32x16xf32>
    %115 = tpu.matmul %4, %114, %cst_61 {dimension_numbers = #tpu.dot_dimension_numbers<[1], [0], [0], [1], [0, 0, 1, 1], [], []>} : vector<32x16xf32>, vector<16x16xf32>, vector<32x16xf32> -> vector<32x16xf32>
    %116 = arith.addf %115, %12 : vector<32x16xf32>
    %cst_62 = arith.constant 0.000000e+00 : f32
    %117 = vector.broadcast %cst_62 : f32 to vector<32x16xf32>
    %118 = arith.cmpf ogt, %116, %117 : vector<32x16xf32>
    %cst_63 = arith.constant 1.000000e-01 : f32
    %119 = vector.broadcast %cst_63 : f32 to vector<32x16xf32>
    %120 = arith.mulf %119, %116 : vector<32x16xf32>
    %121 = arith.select %118, %116, %120 : vector<32x16xi1>, vector<32x16xf32>
    %122 = arith.maximumf %100, %121 : vector<32x16xf32>
    %c0_64 = arith.constant 0 : index
    %c5 = arith.constant 5 : index
    %c0_65 = arith.constant 0 : index
    %123 = vector.load %arg3[%c0_64, %c5, %c0_65] : memref<1x8x16xi32, #tpu.memory_space<vmem>>, vector<1x1x16xi32>
    %124 = vector.shape_cast %123 : vector<1x1x16xi32> to vector<1x16xi32>
    %125 = vector.broadcast %124 : vector<1x16xi32> to vector<16x16xi32>
    %126 = arith.cmpi eq, %13, %125 : vector<16x16xi32>
    %cst_66 = arith.constant 1.000000e+00 : f32
    %cst_67 = arith.constant 0.000000e+00 : f32
    %127 = vector.broadcast %cst_66 : f32 to vector<16x16xf32>
    %128 = vector.broadcast %cst_67 : f32 to vector<16x16xf32>
    %129 = arith.select %126, %127, %128 : vector<16x16xi1>, vector<16x16xf32>
    %cst_68 = arith.constant dense<0.000000e+00> : vector<16x16xf32>
    %130 = tpu.matmul %3, %129, %cst_68 {dimension_numbers = #tpu.dot_dimension_numbers<[1], [0], [0], [1], [0, 0, 1, 1], [], []>} : vector<16x16xf32>, vector<16x16xf32>, vector<16x16xf32> -> vector<16x16xf32>
    %131 = arith.addf %9, %130 : vector<16x16xf32>
    %cst_69 = arith.constant 0.000000e+00 : f32
    %132 = vector.broadcast %cst_69 : f32 to vector<16x16xf32>
    %133 = arith.cmpf ogt, %131, %132 : vector<16x16xf32>
    %cst_70 = arith.constant 1.000000e-01 : f32
    %134 = vector.broadcast %cst_70 : f32 to vector<16x16xf32>
    %135 = arith.mulf %134, %131 : vector<16x16xf32>
    %136 = arith.select %133, %131, %135 : vector<16x16xi1>, vector<16x16xf32>
    %cst_71 = arith.constant dense<0.000000e+00> : vector<32x16xf32>
    %137 = tpu.matmul %4, %136, %cst_71 {dimension_numbers = #tpu.dot_dimension_numbers<[1], [0], [0], [1], [0, 0, 1, 1], [], []>} : vector<32x16xf32>, vector<16x16xf32>, vector<32x16xf32> -> vector<32x16xf32>
    %138 = arith.addf %137, %12 : vector<32x16xf32>
    %cst_72 = arith.constant 0.000000e+00 : f32
    %139 = vector.broadcast %cst_72 : f32 to vector<32x16xf32>
    %140 = arith.cmpf ogt, %138, %139 : vector<32x16xf32>
    %cst_73 = arith.constant 1.000000e-01 : f32
    %141 = vector.broadcast %cst_73 : f32 to vector<32x16xf32>
    %142 = arith.mulf %141, %138 : vector<32x16xf32>
    %143 = arith.select %140, %138, %142 : vector<32x16xi1>, vector<32x16xf32>
    %144 = arith.maximumf %122, %143 : vector<32x16xf32>
    %c0_74 = arith.constant 0 : index
    %c6 = arith.constant 6 : index
    %c0_75 = arith.constant 0 : index
    %145 = vector.load %arg3[%c0_74, %c6, %c0_75] : memref<1x8x16xi32, #tpu.memory_space<vmem>>, vector<1x1x16xi32>
    %146 = vector.shape_cast %145 : vector<1x1x16xi32> to vector<1x16xi32>
    %147 = vector.broadcast %146 : vector<1x16xi32> to vector<16x16xi32>
    %148 = arith.cmpi eq, %13, %147 : vector<16x16xi32>
    %cst_76 = arith.constant 1.000000e+00 : f32
    %cst_77 = arith.constant 0.000000e+00 : f32
    %149 = vector.broadcast %cst_76 : f32 to vector<16x16xf32>
    %150 = vector.broadcast %cst_77 : f32 to vector<16x16xf32>
    %151 = arith.select %148, %149, %150 : vector<16x16xi1>, vector<16x16xf32>
    %cst_78 = arith.constant dense<0.000000e+00> : vector<16x16xf32>
    %152 = tpu.matmul %3, %151, %cst_78 {dimension_numbers = #tpu.dot_dimension_numbers<[1], [0], [0], [1], [0, 0, 1, 1], [], []>} : vector<16x16xf32>, vector<16x16xf32>, vector<16x16xf32> -> vector<16x16xf32>
    %153 = arith.addf %9, %152 : vector<16x16xf32>
    %cst_79 = arith.constant 0.000000e+00 : f32
    %154 = vector.broadcast %cst_79 : f32 to vector<16x16xf32>
    %155 = arith.cmpf ogt, %153, %154 : vector<16x16xf32>
    %cst_80 = arith.constant 1.000000e-01 : f32
    %156 = vector.broadcast %cst_80 : f32 to vector<16x16xf32>
    %157 = arith.mulf %156, %153 : vector<16x16xf32>
    %158 = arith.select %155, %153, %157 : vector<16x16xi1>, vector<16x16xf32>
    %cst_81 = arith.constant dense<0.000000e+00> : vector<32x16xf32>
    %159 = tpu.matmul %4, %158, %cst_81 {dimension_numbers = #tpu.dot_dimension_numbers<[1], [0], [0], [1], [0, 0, 1, 1], [], []>} : vector<32x16xf32>, vector<16x16xf32>, vector<32x16xf32> -> vector<32x16xf32>
    %160 = arith.addf %159, %12 : vector<32x16xf32>
    %cst_82 = arith.constant 0.000000e+00 : f32
    %161 = vector.broadcast %cst_82 : f32 to vector<32x16xf32>
    %162 = arith.cmpf ogt, %160, %161 : vector<32x16xf32>
    %cst_83 = arith.constant 1.000000e-01 : f32
    %163 = vector.broadcast %cst_83 : f32 to vector<32x16xf32>
    %164 = arith.mulf %163, %160 : vector<32x16xf32>
    %165 = arith.select %162, %160, %164 : vector<32x16xi1>, vector<32x16xf32>
    %166 = arith.maximumf %144, %165 : vector<32x16xf32>
    %c0_84 = arith.constant 0 : index
    %c7 = arith.constant 7 : index
    %c0_85 = arith.constant 0 : index
    %167 = vector.load %arg3[%c0_84, %c7, %c0_85] : memref<1x8x16xi32, #tpu.memory_space<vmem>>, vector<1x1x16xi32>
    %168 = vector.shape_cast %167 : vector<1x1x16xi32> to vector<1x16xi32>
    %169 = vector.broadcast %168 : vector<1x16xi32> to vector<16x16xi32>
    %170 = arith.cmpi eq, %13, %169 : vector<16x16xi32>
    %cst_86 = arith.constant 1.000000e+00 : f32
    %cst_87 = arith.constant 0.000000e+00 : f32
    %171 = vector.broadcast %cst_86 : f32 to vector<16x16xf32>
    %172 = vector.broadcast %cst_87 : f32 to vector<16x16xf32>
    %173 = arith.select %170, %171, %172 : vector<16x16xi1>, vector<16x16xf32>
    %cst_88 = arith.constant dense<0.000000e+00> : vector<16x16xf32>
    %174 = tpu.matmul %3, %173, %cst_88 {dimension_numbers = #tpu.dot_dimension_numbers<[1], [0], [0], [1], [0, 0, 1, 1], [], []>} : vector<16x16xf32>, vector<16x16xf32>, vector<16x16xf32> -> vector<16x16xf32>
    %175 = arith.addf %9, %174 : vector<16x16xf32>
    %cst_89 = arith.constant 0.000000e+00 : f32
    %176 = vector.broadcast %cst_89 : f32 to vector<16x16xf32>
    %177 = arith.cmpf ogt, %175, %176 : vector<16x16xf32>
    %cst_90 = arith.constant 1.000000e-01 : f32
    %178 = vector.broadcast %cst_90 : f32 to vector<16x16xf32>
    %179 = arith.mulf %178, %175 : vector<16x16xf32>
    %180 = arith.select %177, %175, %179 : vector<16x16xi1>, vector<16x16xf32>
    %cst_91 = arith.constant dense<0.000000e+00> : vector<32x16xf32>
    %181 = tpu.matmul %4, %180, %cst_91 {dimension_numbers = #tpu.dot_dimension_numbers<[1], [0], [0], [1], [0, 0, 1, 1], [], []>} : vector<32x16xf32>, vector<16x16xf32>, vector<32x16xf32> -> vector<32x16xf32>
    %182 = arith.addf %181, %12 : vector<32x16xf32>
    %cst_92 = arith.constant 0.000000e+00 : f32
    %183 = vector.broadcast %cst_92 : f32 to vector<32x16xf32>
    %184 = arith.cmpf ogt, %182, %183 : vector<32x16xf32>
    %cst_93 = arith.constant 1.000000e-01 : f32
    %185 = vector.broadcast %cst_93 : f32 to vector<32x16xf32>
    %186 = arith.mulf %185, %182 : vector<32x16xf32>
    %187 = arith.select %184, %182, %186 : vector<32x16xi1>, vector<32x16xf32>
    %188 = arith.maximumf %166, %187 : vector<32x16xf32>
    %c0_94 = arith.constant 0 : index
    %c0_95 = arith.constant 0 : index
    %c0_96 = arith.constant 0 : index
    %189 = vector.load %arg9[%c0_94, %c0_95, %c0_96] : memref<1x32x16xf32, #tpu.memory_space<vmem>>, vector<1x32x16xf32>
    %190 = vector.shape_cast %189 : vector<1x32x16xf32> to vector<32x16xf32>
    %191 = vector.shape_cast %188 : vector<32x16xf32> to vector<1x32x16xf32>
    tpu.vector_store %arg9[%c0_94, %c0_95, %c0_96], %191 {strides = array<i32>} : memref<1x32x16xf32, #tpu.memory_space<vmem>>, vector<1x32x16xf32>,
    return
  }
  func.func @transform_0(%arg0: i32, %arg1: i32) -> (i32, i32, i32) {
    %c0_i32 = arith.constant 0 : i32
    %c0_i32_0 = arith.constant 0 : i32
    return %arg0, %c0_i32, %arg1 : i32, i32, i32
  }
  func.func @transform_1(%arg0: i32, %arg1: i32) -> (i32, i32, i32) {
    %c0_i32 = arith.constant 0 : i32
    %c0_i32_0 = arith.constant 0 : i32
    return %arg0, %c0_i32, %arg1 : i32, i32, i32
  }
  func.func @transform_2(%arg0: i32, %arg1: i32) -> (i32, i32, i32) {
    %c0_i32 = arith.constant 0 : i32
    %c0_i32_0 = arith.constant 0 : i32
    %c0_i32_1 = arith.constant 0 : i32
    return %arg0, %c0_i32, %c0_i32_0 : i32, i32, i32
  }
  func.func @transform_3(%arg0: i32, %arg1: i32) -> (i32, i32) {
    %c0_i32 = arith.constant 0 : i32
    %c0_i32_0 = arith.constant 0 : i32
    %c0_i32_1 = arith.constant 0 : i32
    return %c0_i32, %c0_i32_0 : i32, i32
  }
  func.func @transform_4(%arg0: i32, %arg1: i32) -> (i32, i32) {
    %c0_i32 = arith.constant 0 : i32
    %c0_i32_0 = arith.constant 0 : i32
    %c0_i32_1 = arith.constant 0 : i32
    return %c0_i32, %c0_i32_0 : i32, i32
  }
  func.func @transform_5(%arg0: i32, %arg1: i32) -> (i32, i32) {
    %c0_i32 = arith.constant 0 : i32
    %c0_i32_0 = arith.constant 0 : i32
    %c0_i32_1 = arith.constant 0 : i32
    return %c0_i32, %c0_i32_0 : i32, i32
  }
  func.func @transform_6(%arg0: i32, %arg1: i32) -> (i32, i32) {
    %c0_i32 = arith.constant 0 : i32
    %c0_i32_0 = arith.constant 0 : i32
    %c0_i32_1 = arith.constant 0 : i32
    return %c0_i32, %c0_i32_0 : i32, i32
  }
  func.func @transform_7(%arg0: i32, %arg1: i32) -> (i32, i32, i32) {
    %c0_i32 = arith.constant 0 : i32
    %c0_i32_0 = arith.constant 0 : i32
    return %arg0, %c0_i32, %arg1 : i32, i32, i32
  }
}

</mosaic_0001>

<bundles_post_ra>
// kernel: tpu_custom_call.1
= control target key start
LH: loop header
LB: loop body
LE: loop exit
PB: predicated region body
PF: predicated region fallthrough
CT: control target
= control target key end

     0   :  { %s2562_s24 = smov 0   ;;  %s2564_s25 = smov 0   ;;  %s2975_s0 = inlined_call_operand.vmem [shape: f32[2,8,16], index: 0, kind: input, shape index: {}]   ;;  %s2976_s1 = inlined_call_operand.vmem [shape: s32[2,8,16], index: 1, kind: input, shape index: {}]   ;;  %s2977_s2 = inlined_call_operand.vmem [shape: f32[2,16,16], index: 2, kind: input, shape index: {}]   ;;  %s2978_s3 = inlined_call_operand.vmem [shape: f32[16,8], index: 3, kind: input, shape index: {}]   ;;  %s2979_s4 = inlined_call_operand.vmem [shape: f32[16,1], index: 4, kind: input, shape index: {}]   ;;  %s2980_s5 = inlined_call_operand.vmem [shape: f32[32,16], index: 5, kind: input, shape index: {}]   ;;  %s2981_s6 = inlined_call_operand.vmem [shape: f32[32,1], index: 6, kind: input, shape index: {}]   ;;  %s2982_s7 = inlined_call_operand.vmem [shape: f32[2,32,16], index: 7, kind: output, shape index: {}]  }
   0x1   :  { %s2566_s26 = smov 0  }
   0x2 LB: > { %s29_s27 = sadd.s32 1, %s2514_s25  ;;  %p2159_p0 = scmp.ge.s32.totalorder %s2518_s26, 1  ;;  %s2518_s26 = sphi %s2566_s26, %s17_s26   ;;  %s2514_s25 = sphi %s2564_s25, %s2984_s25   ;;  %s2510_s24 = sphi %s2562_s24, %s2983_s24  }
   0x3   : > { %p31_p1 = scmp.ge.s32.totalorder %s29_s27, 2  ;;  %p279_p2 = scmp.lt.s32.totalorder %s2518_s26, 3 }
   0x5   : > { %s2986_s27 = smov (%p31_p1, %s29_s27), 0  ;;  %p280_p3 = pnand %p2159_p0, %p279_p2 }
   0x6   : > { %p328_p4 = scmp.lt.s32.totalorder (!%p280_p3), %s2510_s24, 1 }
   0x7   : > { %283 = sbr.rel (%p280_p3) target bundleno = 1069 (0x42d), region = 48 }
   0xc   : > { %v362_v0 = vld [vmem:[%s2978_s3] sm:$0xff]  ;;  %vm376_vm0 = vcmask 64512   ;;  %v482_v1 = vlaneseq  ;;  %v365_v2 = vld [vmem:[%s2979_s4 + $0x8] sm:$0xff]  ;;  %s2988_s24 = smov (!%p328_p4, %s2510_s24), 1  ;;  %v2520_v4 = vmov 0   ;;  %v2521_v10 = vmov 1.0  }
   0xd   : > { %2329 = vmatprep.mubr.msk.f32.mxu0 %vm376_vm0, %v362_v0  ;;  %2494 = vset.pattern.permute.xlu0 %v2520_v4  ;;  %s2160_s9 = sshll.u32 %s2988_s24, 3  ;;  %s2242_s10 = sshll.u32 %s2988_s24, 4  ;;  %v363_v6 = vld [vmem:[%s2978_s3 + $0x8] sm:$0xff]  ;;  %vm494_vm5 = vcmask 130048   ;;  %v364_v13 = vld [vmem:[%s2979_s4] sm:$0xff]  ;;  %v460_v14 = vld [vmem:[%s2981_s6 + $0x10] sm:$0xff] }
   0xe   : > { %v2589_v3 = vshrl.u32 %v482_v1, 7  ;;  %2495 = vset.pattern.permute.xlu1 %v2520_v4  ;;  %373 = vperm.xlu0 %2494, %v365_v2   ;;  %s334_s13 = scalar_lea.vmem %s2975_s0, %s2160_s9  ;;  %s2602_s16 = scalar_lea.vmem %s2976_s1, %s2160_s9  ;;  %v2646_v15 = vld [vmem:[%s2980_s5] sm:$0xff]  ;;  %v459_v17 = vld [vmem:[%s2981_s6 + $0x8] sm:$0xff]  ;;  %v461_v18 = vld [vmem:[%s2981_s6 + $0x18] sm:$0xff] }
   0xf   : > { %s346_s21 = scalar_lea.vmem %s2977_s2, %s2242_s10  ;;  %v355_v7 = vld [vmem:[%s334_s13] sm:$0xff]  ;;  %v2674_v43 = vld [vmem:[%s2980_s5 + $0x8] sm:$0xff]  ;;  %v2680_v44 = vld [vmem:[%s2980_s5 + $0x10] sm:$0xff] }
  0x10   : > { %v2594_v5 = vadd.s32 8, %v2589_v3  ;;  %v2177_v8 = vld [vmem:[%s2602_s16 + $0x1] ss:$0 sm:$0xff]  ;;  %v2168_v9 = vld [vmem:[%s2602_s16] ss:$0 sm:$0xff]  ;;  %2327 = vmatprep.subr.mxu0 %v355_v7  ;;  %v2623_v12 = vld [vmem:[%s346_s21 + $0x8] sm:$0xff] }
  0x11   : > { %2328 = vmatpush3.msra.mxu0 %v355_v7  ;;  %vm698_vm3 = vcmp.eq.s32.totalorder %v2589_v3, %v2177_v8  ;;  %vm490_vm4 = vcmp.eq.s32.totalorder %v2589_v3, %v2168_v9  ;;  %v2617_v11 = vld [vmem:[%s346_s21] sm:$0xff]  ;;  %v2693_v45 = vld [vmem:[%s2980_s5 + $0x18] sm:$0xff] }
  0x12   : > { %vm699_vm1 = vcmp.eq.s32.totalorder %v2594_v5, %v2177_v8  ;;  %vm491_vm2 = vcmp.eq.s32.totalorder %v2594_v5, %v2168_v9  ;;  %2330 = vmatmul.mubr.msk.f32.vlgmr.msra.gmra.mxu0 %vm376_vm0, %v363_v6  ;;  %2353 = vmatprep.mubr.msk.f32.mxu1 %vm494_vm5, %v2617_v11  ;;  %v458_v16 = vld [vmem:[%s2981_s6] sm:$0xff] }
  0x13   : > { %2349 = vmatprep.subr.msk.mxu1 %vm699_vm1, %v2521_v10  ;;  %2332 = vmatprep.subr.msk.mxu0 %vm491_vm2, %v2521_v10  ;;  %v2186_v39 = vld [vmem:[%s2602_s16 + $0x2] ss:$0 sm:$0xff]  ;;  %v2195_v40 = vld [vmem:[%s2602_s16 + $0x3] ss:$0 sm:$0xff] }
  0x14   : > { %2350 = vmatpush3.msk.msra.mxu1 %vm699_vm1, %v2521_v10  ;;  %2333 = vmatpush3.msk.msra.mxu0 %vm491_vm2, %v2521_v10  ;;  %vm892_vm10 = vcmp.eq.s32.totalorder %v2594_v5, %v2186_v39  ;;  %vm1085_vm11 = vcmp.eq.s32.totalorder %v2594_v5, %v2195_v40  ;;  %vm891_vm12 = vcmp.eq.s32.totalorder %v2589_v3, %v2186_v39 }
  0x15   : > { %2351 = vmatprep.subr.msk.mxu1 %vm698_vm3, %v2521_v10  ;;  %2334 = vmatprep.subr.msk.mxu0 %vm490_vm4, %v2521_v10  ;;  %vm1084_vm13 = vcmp.eq.s32.totalorder %v2589_v3, %v2195_v40 }
  0x16   : > { %2352 = vmatpush3.msk.msra.mxu1 %vm698_vm3, %v2521_v10  ;;  %2335 = vmatpush3.msk.msra.mxu0 %vm490_vm4, %v2521_v10 }
  0x17   : > { %2336 = vmatprep.mubr.msk.f32.mxu0 %vm494_vm5, %v2617_v11  ;;  %2354 = vmatmul.mubr.msk.f32.vlgmr.msra.gmra.mxu1 %vm494_vm5, %v2623_v12 }
  0x18   : > { %2337 = vmatmul.mubr.msk.f32.vlgmr.msra.gmra.mxu0 %vm494_vm5, %v2623_v12  ;;  %368 = vperm.xlu0 %2494, %v364_v13  }
  0x19   : > { %2360 = vmatprep.mubr.msk.f32.mxu1 %vm494_vm5, %v2646_v15  ;;  %2343 = vmatprep.mubr.msk.f32.mxu0 %vm494_vm5, %v2646_v15 }
  0x1a   : > { %464 = vperm.xlu1 %2495, %v458_v16  }
  0x1c   : > { %474 = vperm.xlu0 %2494, %v460_v14  }
  0x1e   : > { %469 = vperm.xlu1 %2495, %v459_v17  }
  0x22   : > { %479 = vperm.xlu1 %2495, %v461_v18  }
  0x89   : > { %v374_v19 = vpop.permute.xlu0 %373 }
  0x93   : > { %v369_v23 = vpop.permute.xlu0 %368 }
  0x95   : > { %v2722_v46 = vpop.permute.xlu1 %464 }
  0x97   : > { %v2740_v7 = vpop.permute.xlu0 %474 }
  0x99   : > { %v2724_v47 = vpop.permute.xlu1 %469 }
  0x9d   : > { %v2728_v52 = vpop.permute.xlu1 %479 }
  0xd2   : > { %v2331_v20 = vpop.f32.mrf.mxu0 }
  0xd3   : > { %v2661_v21 = vadd.f32 %v2331_v20, %v374_v19 }
  0xd4   : > { %v449_v22 = vpop.f32.mrf.mxu0 }
  0xd5   : > { %v2663_v24 = vadd.f32 %v449_v22, %v369_v23 }
  0xd7   : > { %v2355_v25 = vpop.f32.mrf.mxu1 }
  0xd8   : > { %v2338_v26 = vpop.f32.mrf.mxu0  ;;  %v778_v27 = vadd.f32 %v2355_v25, %v2661_v21 }
  0xd9   : > { %v577_v28 = vadd.f32 %v2338_v26, %v2661_v21  ;;  %v768_v29 = vpop.f32.mrf.mxu1 }
  0xda   : > { %v567_v30 = vpop.f32.mrf.mxu0  ;;  %v782_v31 = vmul.f32 0.1, %v778_v27  ;;  %v777_v33 = vadd.f32 %v768_v29, %v2663_v24  ;;  %vm780_vm6 = vcmp.gt.f32.partialorder %v778_v27, 0.0 }
  0xdb   : > { %v581_v32 = vmul.f32 0.1, %v577_v28  ;;  %v576_v34 = vadd.f32 %v567_v30, %v2663_v24  ;;  %vm579_vm7 = vcmp.gt.f32.partialorder %v577_v28, 0.0 }
  0xdc   : > { %v781_v35 = vmul.f32 0.1, %v777_v33  ;;  %v784_v37 = vsel %vm780_vm6, %v778_v27, %v782_v31  ;;  %vm779_vm8 = vcmp.gt.f32.partialorder %v777_v33, 0.0 }
  0xdd   : > { %v580_v36 = vmul.f32 0.1, %v576_v34  ;;  %v583_v38 = vsel %vm579_vm7, %v577_v28, %v581_v32  ;;  %2356 = vmatprep.subr.mxu1 %v784_v37  ;;  %vm578_vm9 = vcmp.gt.f32.partialorder %v576_v34, 0.0 }
  0xde   : > { %2339 = vmatprep.subr.mxu0 %v583_v38  ;;  %2357 = vmatpush3.msra.mxu1 %v784_v37  ;;  %v783_v41 = vsel %vm779_vm8, %v777_v33, %v781_v35 }
  0xdf   : > { %2340 = vmatpush3.msra.mxu0 %v583_v38  ;;  %v582_v42 = vsel %vm578_vm9, %v576_v34, %v580_v36  ;;  %2358 = vmatprep.subr.mxu1 %v783_v41 }
  0xe0   : > { %2341 = vmatprep.subr.mxu0 %v582_v42  ;;  %2359 = vmatpush3.msra.mxu1 %v783_v41 }
  0xe1   : > { %2342 = vmatpush3.msra.mxu0 %v582_v42  ;;  %2361 = vmatmul.mubr.msk.f32.vlgmr.msra.gmra.mxu1 %vm494_vm5, %v2674_v43 }
  0xe2   : > { %2344 = vmatmul.mubr.msk.f32.vlgmr.msra.gmra.mxu0 %vm494_vm5, %v2674_v43  ;;  %2366 = vmatprep.subr.msk.mxu0 %vm892_vm10, %v2521_v10 }
  0xe3   : > { %2363 = vmatprep.mubr.msk.f32.mxu1 %vm494_vm5, %v2680_v44  ;;  %2367 = vmatpush3.msk.msra.mxu0 %vm892_vm10, %v2521_v10 }
  0xe4   : > { %2383 = vmatprep.subr.msk.mxu1 %vm1085_vm11, %v2521_v10  ;;  %2346 = vmatprep.mubr.msk.f32.mxu0 %vm494_vm5, %v2680_v44 }
  0xe5   : > { %2384 = vmatpush3.msk.msra.mxu1 %vm1085_vm11, %v2521_v10  ;;  %2368 = vmatprep.subr.msk.mxu0 %vm891_vm12, %v2521_v10 }
  0xe6   : > { %2364 = vmatmul.mubr.msk.f32.gmra.mxu1 %vm494_vm5, %v2693_v45  ;;  %2347 = vmatmul.mubr.msk.f32.gmra.mxu0 %vm494_vm5, %v2693_v45 }
  0xe7   : > { %2385 = vmatprep.subr.msk.mxu1 %vm1084_vm13, %v2521_v10  ;;  %2369 = vmatpush3.msk.msra.mxu0 %vm891_vm12, %v2521_v10 }
  0xe8   : > { %2386 = vmatpush3.msk.msra.mxu1 %vm1084_vm13, %v2521_v10  ;;  %2387 = vmatprep.mubr.msk.f32.mxu1 %vm494_vm5, %v2617_v11 }
  0xe9   : > { %2370 = vmatprep.mubr.msk.f32.mxu0 %vm494_vm5, %v2617_v11 }
  0xea   : > { %2388 = vmatmul.mubr.msk.f32.vlgmr.msra.gmra.mxu1 %vm494_vm5, %v2623_v12  ;;  %2371 = vmatmul.mubr.msk.f32.vlgmr.msra.gmra.mxu0 %vm494_vm5, %v2623_v12 }
  0xeb   : > { %2394 = vmatprep.mubr.msk.f32.mxu1 %vm494_vm5, %v2646_v15  ;;  %2377 = vmatprep.mubr.msk.f32.mxu0 %vm494_vm5, %v2646_v15 }
 0x1a1   : > { %v2362_v48 = vpop.f32.mrf.mxu1 }
 0x1a2   : > { %v2345_v49 = vpop.f32.mrf.mxu0  ;;  %v857_v51 = vadd.f32 %v2362_v48, %v2724_v47  ;;  %v2204_v48 = vld [vmem:[%s2602_s16 + $0x4] ss:$0 sm:$0xff] }
 0x1a3   : > { %v668_v50 = vadd.f32 %v2345_v49, %v2724_v47  ;;  %v851_v53 = vpop.f32.mrf.mxu1  ;;  %vm1278_vm11 = vcmp.eq.s32.totalorder %v2594_v5, %v2204_v48  ;;  %vm1277_vm13 = vcmp.eq.s32.totalorder %v2589_v3, %v2204_v48 }
 0x1a4   : > { %v662_v54 = vpop.f32.mrf.mxu0  ;;  %vm871_vm15 = vcmp.gt.f32.partialorder %v857_v51, 0.0  ;;  %v875_v56 = vmul.f32 0.1, %v857_v51  ;;  %v852_v57 = vadd.f32 %v851_v53, %v2722_v46  ;;  %v2213_v53 = vld [vmem:[%s2602_s16 + $0x5] ss:$0 sm:$0xff] }
 0x1a5   : > { %vm682_vm14 = vcmp.gt.f32.partialorder %v668_v50, 0.0  ;;  %v686_v55 = vmul.f32 0.1, %v668_v50  ;;  %v663_v58 = vadd.f32 %v662_v54, %v2722_v46  ;;  %vm1471_vm12 = vcmp.eq.s32.totalorder %v2594_v5, %v2213_v53 }
 0x1a6   : > { %v2365_v59 = vpop.f32.mrf.mxu1  ;;  %v2348_v60 = vpop.f32.mrf.mxu0  ;;  %v2734_v62 = vsel %vm871_vm15, %v857_v51, %v875_v56  ;;  %vm870_vm0 = vcmp.gt.f32.partialorder %v852_v57, 0.0  ;;  %v874_v2 = vmul.f32 0.1, %v852_v57 }
 0x1a7   : > { %v2732_v61 = vsel %vm682_vm14, %v668_v50, %v686_v55  ;;  %v678_v63 = vadd.f32 %v2348_v60, %v2728_v52  ;;  %v867_v0 = vadd.f32 %v2365_v59, %v2728_v52  ;;  %vm681_vm1 = vcmp.gt.f32.partialorder %v663_v58, 0.0 }
 0x1a8   : > { %v883_v1 = vmax.f32 %v2732_v61, %v2734_v62  ;;  %v861_v4 = vpop.f32.mrf.mxu1  ;;  %v672_v6 = vpop.f32.mrf.mxu0  ;;  %v685_v8 = vmul.f32 0.1, %v663_v58  ;;  %v2742_v13 = vsel %vm870_vm0, %v852_v57, %v874_v2  ;;  %vm1470_vm14 = vcmp.eq.s32.totalorder %v2589_v3, %v2213_v53 }
 0x1a9   : > { %vm684_vm2 = vcmp.gt.f32.partialorder %v678_v63, 0.0  ;;  %v688_v9 = vmul.f32 0.1, %v678_v63  ;;  %vm873_vm3 = vcmp.gt.f32.partialorder %v867_v0, 0.0  ;;  %v877_v14 = vmul.f32 0.1, %v867_v0 }
 0x1aa   : > { %v862_v16 = vadd.f32 %v861_v4, %v2740_v7  ;;  %v673_v17 = vadd.f32 %v672_v6, %v2740_v7  ;;  %v2389_v18 = vpop.f32.mrf.mxu1  ;;  %v2372_v19 = vpop.f32.mrf.mxu0  ;;  %v2746_v20 = vsel %vm681_vm1, %v663_v58, %v685_v8 }
 0x1ab   : > { %v2748_v22 = vsel %vm684_vm2, %v678_v63, %v688_v9  ;;  %v1164_v23 = vadd.f32 %v2389_v18, %v2661_v21  ;;  %v971_v25 = vadd.f32 %v2372_v19, %v2661_v21  ;;  %v882_v26 = vmax.f32 %v2746_v20, %v2742_v13 }
 0x1ac   : > { %v2754_v27 = vsel %vm873_vm3, %v867_v0, %v877_v14  ;;  %vm872_vm4 = vcmp.gt.f32.partialorder %v862_v16, 0.0  ;;  %v876_v28 = vmul.f32 0.1, %v862_v16  ;;  %v1154_v29 = vpop.f32.mrf.mxu1  ;;  %v961_v30 = vpop.f32.mrf.mxu0  ;;  %vm683_vm6 = vcmp.gt.f32.partialorder %v673_v17, 0.0 }
 0x1ad   : > { %v885_v31 = vmax.f32 %v2748_v22, %v2754_v27  ;;  %v687_v32 = vmul.f32 0.1, %v673_v17  ;;  %v1168_v33 = vmul.f32 0.1, %v1164_v23  ;;  %v975_v35 = vmul.f32 0.1, %v971_v25 }
 0x1ae   : > { %v2758_v34 = vsel %vm872_vm4, %v862_v16, %v876_v28  ;;  %v1163_v36 = vadd.f32 %v1154_v29, %v2663_v24  ;;  %v970_v37 = vadd.f32 %v961_v30, %v2663_v24  ;;  %vm1166_vm7 = vcmp.gt.f32.partialorder %v1164_v23, 0.0 }
 0x1af   : > { %v2762_v38 = vsel %vm683_vm6, %v673_v17, %v687_v32  ;;  %vm973_vm8 = vcmp.gt.f32.partialorder %v971_v25, 0.0  ;;  %v1170_v42 = vsel %vm1166_vm7, %v1164_v23, %v1168_v33 }
 0x1b0   : > { %v884_v39 = vmax.f32 %v2762_v38, %v2758_v34  ;;  %v1167_v40 = vmul.f32 0.1, %v1163_v36  ;;  %v974_v41 = vmul.f32 0.1, %v970_v37  ;;  %2390 = vmatprep.subr.mxu1 %v1170_v42  ;;  %v977_v49 = vsel %vm973_vm8, %v971_v25, %v975_v35 }
 0x1b1   : > { %vm1165_vm9 = vcmp.gt.f32.partialorder %v1163_v36, 0.0  ;;  %vm972_vm10 = vcmp.gt.f32.partialorder %v970_v37, 0.0  ;;  %2373 = vmatprep.subr.mxu0 %v977_v49  ;;  %2391 = vmatpush3.msra.mxu1 %v1170_v42 }
 0x1b2   : > { %v1169_v50 = vsel %vm1165_vm9, %v1163_v36, %v1167_v40  ;;  %v976_v51 = vsel %vm972_vm10, %v970_v37, %v974_v41  ;;  %2374 = vmatpush3.msra.mxu0 %v977_v49 }
 0x1b3   : > { %2392 = vmatprep.subr.mxu1 %v1169_v50  ;;  %2375 = vmatprep.subr.mxu0 %v976_v51 }
 0x1b4   : > { %2393 = vmatpush3.msra.mxu1 %v1169_v50  ;;  %2376 = vmatpush3.msra.mxu0 %v976_v51 }
 0x1b5   : > { %2395 = vmatmul.mubr.msk.f32.vlgmr.msra.gmra.mxu1 %vm494_vm5, %v2674_v43  ;;  %2378 = vmatmul.mubr.msk.f32.vlgmr.msra.gmra.mxu0 %vm494_vm5, %v2674_v43 }
 0x1b6   : > { %2400 = vmatprep.subr.msk.mxu0 %vm1278_vm11, %v2521_v10  ;;  %2397 = vmatprep.mubr.msk.f32.mxu1 %vm494_vm5, %v2680_v44 }
 0x1b7   : > { %2401 = vmatpush3.msk.msra.mxu0 %vm1278_vm11, %v2521_v10  ;;  %2417 = vmatprep.subr.msk.mxu1 %vm1471_vm12, %v2521_v10 }
 0x1b8   : > { %2380 = vmatprep.mubr.msk.f32.mxu0 %vm494_vm5, %v2680_v44  ;;  %2402 = vmatprep.subr.msk.mxu0 %vm1277_vm13, %v2521_v10 }
 0x1b9   : > { %2398 = vmatmul.mubr.msk.f32.gmra.mxu1 %vm494_vm5, %v2693_v45  ;;  %2381 = vmatmul.mubr.msk.f32.gmra.mxu0 %vm494_vm5, %v2693_v45 }
 0x1ba   : > { %2418 = vmatpush3.msk.msra.mxu1 %vm1471_vm12, %v2521_v10  ;;  %2403 = vmatpush3.msk.msra.mxu0 %vm1277_vm13, %v2521_v10 }
 0x1bb   : > { %2419 = vmatprep.subr.msk.mxu1 %vm1470_vm14, %v2521_v10  ;;  %2421 = vmatprep.mubr.msk.f32.mxu1 %vm494_vm5, %v2617_v11 }
 0x1bc   : > { %2420 = vmatpush3.msk.msra.mxu1 %vm1470_vm14, %v2521_v10  ;;  %2404 = vmatprep.mubr.msk.f32.mxu0 %vm494_vm5, %v2617_v11 }
 0x1bd   : > { %2422 = vmatmul.mubr.msk.f32.vlgmr.msra.gmra.mxu1 %vm494_vm5, %v2623_v12  ;;  %2405 = vmatmul.mubr.msk.f32.vlgmr.msra.gmra.mxu0 %vm494_vm5, %v2623_v12 }
 0x1be   : > { %2428 = vmatprep.mubr.msk.f32.mxu1 %vm494_vm5, %v2646_v15  ;;  %2411 = vmatprep.mubr.msk.f32.mxu0 %vm494_vm5, %v2646_v15 }
 0x275   : > { %v2396_v54 = vpop.f32.mrf.mxu1  ;;  %v2379_v56 = vpop.f32.mrf.mxu0 }
 0x276   : > { %v1243_v55 = vadd.f32 %v2396_v54, %v2724_v47  ;;  %v1050_v57 = vadd.f32 %v2379_v56, %v2724_v47 }
 0x277   : > { %v1237_v58 = vpop.f32.mrf.mxu1  ;;  %v1044_v63 = vpop.f32.mrf.mxu0 }
 0x278   : > { %vm1257_vm15 = vcmp.gt.f32.partialorder %v1243_v55, 0.0  ;;  %v1261_v59 = vmul.f32 0.1, %v1243_v55  ;;  %v1238_v60 = vadd.f32 %v1237_v58, %v2722_v46  ;;  %vm1064_vm0 = vcmp.gt.f32.partialorder %v1050_v57, 0.0  ;;  %v2222_v58 = vld [vmem:[%s2602_s16 + $0x6] ss:$0 sm:$0xff] }
 0x279   : > { %v1068_v0 = vmul.f32 0.1, %v1050_v57  ;;  %v1045_v2 = vadd.f32 %v1044_v63, %v2722_v46  ;;  %v2399_v4 = vpop.f32.mrf.mxu1  ;;  %v2382_v14 = vpop.f32.mrf.mxu0  ;;  %vm1664_vm12 = vcmp.eq.s32.totalorder %v2594_v5, %v2222_v58  ;;  %vm1663_vm14 = vcmp.eq.s32.totalorder %v2589_v3, %v2222_v58 }
 0x27a   : > { %v2808_v6 = vsel %vm1257_vm15, %v1243_v55, %v1261_v59  ;;  %vm1256_vm1 = vcmp.gt.f32.partialorder %v1238_v60, 0.0  ;;  %v1260_v8 = vmul.f32 0.1, %v1238_v60  ;;  %v1253_v9 = vadd.f32 %v2399_v4, %v2728_v52 }
 0x27b   : > { %v1072_v16 = vsel %vm1064_vm0, %v1050_v57, %v1068_v0  ;;  %vm1063_vm2 = vcmp.gt.f32.partialorder %v1045_v2, 0.0  ;;  %v1067_v17 = vmul.f32 0.1, %v1045_v2  ;;  %v1060_v18 = vadd.f32 %v2382_v14, %v2728_v52  ;;  %v1247_v19 = vpop.f32.mrf.mxu1  ;;  %v1054_v29 = vpop.f32.mrf.mxu0 }
 0x27c   : > { %v2815_v23 = vmax.f32 %v883_v1, %v1072_v16  ;;  %v2817_v25 = vsel %vm1256_vm1, %v1238_v60, %v1260_v8  ;;  %vm1259_vm3 = vcmp.gt.f32.partialorder %v1253_v9, 0.0  ;;  %v1263_v28 = vmul.f32 0.1, %v1253_v9 }
 0x27d   : > { %v1071_v30 = vsel %vm1063_vm2, %v1045_v2, %v1067_v17  ;;  %vm1066_vm4 = vcmp.gt.f32.partialorder %v1060_v18, 0.0  ;;  %v1070_v32 = vmul.f32 0.1, %v1060_v18  ;;  %v1248_v33 = vadd.f32 %v1247_v19, %v2740_v7  ;;  %v2423_v35 = vpop.f32.mrf.mxu1  ;;  %v2406_v1 = vpop.f32.mrf.mxu0  ;;  %v2231_v2 = vld [vmem:[%s2602_s16 + $0x7] ss:$0 sm:$0xff]  ;;  %s2243_s16 = sshll.u32 %s2988_s24, 5 }
 0x27e   : > { %v2823_v36 = vmax.f32 %v882_v26, %v1071_v30  ;;  %v2825_v37 = vsel %vm1259_vm3, %v1253_v9, %v1263_v28  ;;  %v1055_v61 = vadd.f32 %v1054_v29, %v2740_v7  ;;  %v1550_v62 = vadd.f32 %v2423_v35, %v2661_v21  ;;  %s354_s28 = scalar_lea.vmem %s2982_s7, %s2243_s16 }
 0x27f   : > { %v1074_v40 = vsel %vm1066_vm4, %v1060_v18, %v1070_v32  ;;  %vm1258_vm6 = vcmp.gt.f32.partialorder %v1248_v33, 0.0  ;;  %v1262_v41 = vmul.f32 0.1, %v1248_v33  ;;  %v1357_v42 = vadd.f32 %v2406_v1, %v2661_v21  ;;  %v1540_v48 = vpop.f32.mrf.mxu1  ;;  %v1347_v26 = vpop.f32.mrf.mxu0 }
 0x280   : > { %v2833_v49 = vmax.f32 %v885_v31, %v1074_v40  ;;  %vm1065_vm7 = vcmp.gt.f32.partialorder %v1055_v61, 0.0  ;;  %v1069_v13 = vmul.f32 0.1, %v1055_v61  ;;  %v1554_v20 = vmul.f32 0.1, %v1550_v62 }
 0x281   : > { %v2835_v50 = vsel %vm1258_vm6, %v1248_v33, %v1262_v41  ;;  %v1361_v51 = vmul.f32 0.1, %v1357_v42  ;;  %v1549_v53 = vadd.f32 %v1540_v48, %v2663_v24  ;;  %v1356_v54 = vadd.f32 %v1347_v26, %v2663_v24 }
 0x282   : > { %v1073_v55 = vsel %vm1065_vm7, %v1055_v61, %v1069_v13  ;;  %vm1552_vm8 = vcmp.gt.f32.partialorder %v1550_v62, 0.0  ;;  %vm1359_vm9 = vcmp.gt.f32.partialorder %v1357_v42, 0.0  ;;  %v1269_v22 = vmax.f32 %v2815_v23, %v2808_v6 }
 0x283   : > { %v2844_v27 = vmax.f32 %v884_v39, %v1073_v55  ;;  %v1553_v31 = vmul.f32 0.1, %v1549_v53  ;;  %v1360_v56 = vmul.f32 0.1, %v1356_v54  ;;  %v1556_v57 = vsel %vm1552_vm8, %v1550_v62, %v1554_v20 }
 0x284   : > { %2424 = vmatprep.subr.mxu1 %v1556_v57  ;;  %v1363_v59 = vsel %vm1359_vm9, %v1357_v42, %v1361_v51  ;;  %vm1551_vm10 = vcmp.gt.f32.partialorder %v1549_v53, 0.0  ;;  %vm1358_vm11 = vcmp.gt.f32.partialorder %v1356_v54, 0.0  ;;  %v1268_v60 = vmax.f32 %v2823_v36, %v2817_v25 }
 0x285   : > { %2407 = vmatprep.subr.mxu0 %v1363_v59  ;;  %2425 = vmatpush3.msra.mxu1 %v1556_v57  ;;  %v1555_v63 = vsel %vm1551_vm10, %v1549_v53, %v1553_v31  ;;  %v1362_v0 = vsel %vm1358_vm11, %v1356_v54, %v1360_v56  ;;  %v1271_v34 = vmax.f32 %v2833_v49, %v2825_v37 }
 0x286   : > { %2408 = vmatpush3.msra.mxu0 %v1363_v59  ;;  %2426 = vmatprep.subr.mxu1 %v1555_v63  ;;  %v1270_v38 = vmax.f32 %v2844_v27, %v2835_v50  ;;  %vm1857_vm13 = vcmp.eq.s32.totalorder %v2594_v5, %v2231_v2  ;;  %vm1856_vm15 = vcmp.eq.s32.totalorder %v2589_v3, %v2231_v2 }
 0x287   : > { %2409 = vmatprep.subr.mxu0 %v1362_v0  ;;  %2427 = vmatpush3.msra.mxu1 %v1555_v63 }
 0x288   : > { %2410 = vmatpush3.msra.mxu0 %v1362_v0  ;;  %2429 = vmatmul.mubr.msk.f32.vlgmr.msra.gmra.mxu1 %vm494_vm5, %v2674_v43 }
 0x289   : > { %2412 = vmatmul.mubr.msk.f32.vlgmr.msra.gmra.mxu0 %vm494_vm5, %v2674_v43  ;;  %2434 = vmatprep.subr.msk.mxu0 %vm1664_vm12, %v2521_v10 }
 0x28a   : > { %2435 = vmatpush3.msk.msra.mxu0 %vm1664_vm12, %v2521_v10  ;;  %2431 = vmatprep.mubr.msk.f32.mxu1 %vm494_vm5, %v2680_v44 }
 0x28b   : > { %2451 = vmatprep.subr.msk.mxu1 %vm1857_vm13, %v2521_v10  ;;  %2414 = vmatprep.mubr.msk.f32.mxu0 %vm494_vm5, %v2680_v44 }
 0x28c   : > { %2432 = vmatmul.mubr.msk.f32.gmra.mxu1 %vm494_vm5, %v2693_v45  ;;  %2436 = vmatprep.subr.msk.mxu0 %vm1663_vm14, %v2521_v10 }
 0x28d   : > { %2452 = vmatpush3.msk.msra.mxu1 %vm1857_vm13, %v2521_v10  ;;  %2415 = vmatmul.mubr.msk.f32.gmra.mxu0 %vm494_vm5, %v2693_v45 }
 0x28e   : > { %2437 = vmatpush3.msk.msra.mxu0 %vm1663_vm14, %v2521_v10  ;;  %2453 = vmatprep.subr.msk.mxu1 %vm1856_vm15, %v2521_v10 }
 0x28f   : > { %2454 = vmatpush3.msk.msra.mxu1 %vm1856_vm15, %v2521_v10  ;;  %2455 = vmatprep.mubr.msk.f32.mxu1 %vm494_vm5, %v2617_v11 }
 0x290   : > { %2438 = vmatprep.mubr.msk.f32.mxu0 %vm494_vm5, %v2617_v11  ;;  %2456 = vmatmul.mubr.msk.f32.vlgmr.msra.gmra.mxu1 %vm494_vm5, %v2623_v12 }
 0x291   : > { %2439 = vmatmul.mubr.msk.f32.vlgmr.msra.gmra.mxu0 %vm494_vm5, %v2623_v12  ;;  %2462 = vmatprep.mubr.msk.f32.mxu1 %vm494_vm5, %v2646_v15 }
 0x292   : > { %2445 = vmatprep.mubr.msk.f32.mxu0 %vm494_vm5, %v2646_v15 }
 0x348   : > { %v2430_v3 = vpop.f32.mrf.mxu1 }
 0x349   : > { %v1629_v5 = vadd.f32 %v2430_v3, %v2724_v47  ;;  %v2413_v10 = vpop.f32.mrf.mxu0 }
 0x34a   : > { %v1436_v39 = vadd.f32 %v2413_v10, %v2724_v47  ;;  %v1623_v4 = vpop.f32.mrf.mxu1 }
 0x34b   : > { %vm1643_vm0 = vcmp.gt.f32.partialorder %v1629_v5, 0.0  ;;  %v1647_v11 = vmul.f32 0.1, %v1629_v5  ;;  %v1624_v8 = vadd.f32 %v1623_v4, %v2722_v46  ;;  %v1430_v9 = vpop.f32.mrf.mxu0 }
 0x34c   : > { %vm1450_vm1 = vcmp.gt.f32.partialorder %v1436_v39, 0.0  ;;  %v1454_v12 = vmul.f32 0.1, %v1436_v39  ;;  %v1431_v14 = vadd.f32 %v1430_v9, %v2722_v46  ;;  %v2433_v16 = vpop.f32.mrf.mxu1 }
 0x34d   : > { %v2894_v17 = vsel %vm1643_vm0, %v1629_v5, %v1647_v11  ;;  %vm1642_vm2 = vcmp.gt.f32.partialorder %v1624_v8, 0.0  ;;  %v1646_v15 = vmul.f32 0.1, %v1624_v8  ;;  %v1639_v18 = vadd.f32 %v2433_v16, %v2728_v52  ;;  %v2416_v19 = vpop.f32.mrf.mxu0 }
 0x34e   : > { %v1458_v28 = vsel %vm1450_vm1, %v1436_v39, %v1454_v12  ;;  %vm1449_vm3 = vcmp.gt.f32.partialorder %v1431_v14, 0.0  ;;  %v1453_v29 = vmul.f32 0.1, %v1431_v14  ;;  %v1446_v30 = vadd.f32 %v2416_v19, %v2728_v52  ;;  %v1633_v32 = vpop.f32.mrf.mxu1 }
 0x34f   : > { %v2901_v33 = vmax.f32 %v1269_v22, %v1458_v28  ;;  %v2903_v35 = vsel %vm1642_vm2, %v1624_v8, %v1646_v15  ;;  %vm1645_vm4 = vcmp.gt.f32.partialorder %v1639_v18, 0.0  ;;  %v1649_v61 = vmul.f32 0.1, %v1639_v18  ;;  %v1440_v62 = vpop.f32.mrf.mxu0 }
 0x350   : > { %v1457_v1 = vsel %vm1449_vm3, %v1431_v14, %v1453_v29  ;;  %vm1452_vm6 = vcmp.gt.f32.partialorder %v1446_v30, 0.0  ;;  %v1456_v40 = vmul.f32 0.1, %v1446_v30  ;;  %v1634_v41 = vadd.f32 %v1633_v32, %v2740_v7  ;;  %v2457_v42 = vpop.f32.mrf.mxu1 }
 0x351   : > { %v2909_v48 = vmax.f32 %v1268_v60, %v1457_v1  ;;  %v2911_v13 = vsel %vm1645_vm4, %v1639_v18, %v1649_v61  ;;  %v1441_v6 = vadd.f32 %v1440_v62, %v2740_v7  ;;  %v1936_v23 = vadd.f32 %v2457_v42, %v2661_v21  ;;  %v2440_v20 = vpop.f32.mrf.mxu0 }
 0x352   : > { %v1460_v26 = vsel %vm1452_vm6, %v1446_v30, %v1456_v40  ;;  %vm1644_vm7 = vcmp.gt.f32.partialorder %v1634_v41, 0.0  ;;  %v1648_v51 = vmul.f32 0.1, %v1634_v41  ;;  %v1743_v53 = vadd.f32 %v2440_v20, %v2661_v21  ;;  %v1926_v54 = vpop.f32.mrf.mxu1 }
 0x353   : > { %v2919_v55 = vmax.f32 %v1271_v34, %v1460_v26  ;;  %vm1451_vm8 = vcmp.gt.f32.partialorder %v1441_v6, 0.0  ;;  %v1455_v25 = vmul.f32 0.1, %v1441_v6  ;;  %v1940_v36 = vmul.f32 0.1, %v1936_v23  ;;  %v1733_v22 = vpop.f32.mrf.mxu0 }
 0x354   : > { %v2921_v31 = vsel %vm1644_vm7, %v1634_v41, %v1648_v51  ;;  %v1747_v56 = vmul.f32 0.1, %v1743_v53  ;;  %v1935_v57 = vadd.f32 %v1926_v54, %v2663_v24  ;;  %v1742_v58 = vadd.f32 %v1733_v22, %v2663_v24 }
 0x355   : > { %v1459_v59 = vsel %vm1451_vm8, %v1441_v6, %v1455_v25  ;;  %vm1938_vm9 = vcmp.gt.f32.partialorder %v1936_v23, 0.0  ;;  %vm1745_vm10 = vcmp.gt.f32.partialorder %v1743_v53, 0.0  ;;  %v1655_v21 = vmax.f32 %v2901_v33, %v2894_v17 }
 0x356   : > { %v2930_v37 = vmax.f32 %v1270_v38, %v1459_v59  ;;  %v1939_v49 = vmul.f32 0.1, %v1935_v57  ;;  %v1746_v60 = vmul.f32 0.1, %v1742_v58  ;;  %v1942_v63 = vsel %vm1938_vm9, %v1936_v23, %v1940_v36 }
 0x357   : > { %2458 = vmatprep.subr.mxu1 %v1942_v63  ;;  %v1749_v0 = vsel %vm1745_vm10, %v1743_v53, %v1747_v56  ;;  %vm1937_vm11 = vcmp.gt.f32.partialorder %v1935_v57, 0.0  ;;  %vm1744_vm12 = vcmp.gt.f32.partialorder %v1742_v58, 0.0  ;;  %v1654_v24 = vmax.f32 %v2909_v48, %v2903_v35 }
 0x358   : > { %2441 = vmatprep.subr.mxu0 %v1749_v0  ;;  %2459 = vmatpush3.msra.mxu1 %v1942_v63  ;;  %v1941_v2 = vsel %vm1937_vm11, %v1935_v57, %v1939_v49  ;;  %v1748_v34 = vsel %vm1744_vm12, %v1742_v58, %v1746_v60  ;;  %v1657_v3 = vmax.f32 %v2919_v55, %v2911_v13 }
 0x359   : > { %2442 = vmatpush3.msra.mxu0 %v1749_v0  ;;  %2460 = vmatprep.subr.mxu1 %v1941_v2  ;;  %v1656_v50 = vmax.f32 %v2930_v37, %v2921_v31 }
 0x35a   : > { %2443 = vmatprep.subr.mxu0 %v1748_v34  ;;  %2461 = vmatpush3.msra.mxu1 %v1941_v2 }
 0x35b   : > { %2444 = vmatpush3.msra.mxu0 %v1748_v34  ;;  %2463 = vmatmul.mubr.msk.f32.vlgmr.msra.gmra.mxu1 %vm494_vm5, %v2674_v43 }
 0x35c   : > { %2446 = vmatmul.mubr.msk.f32.vlgmr.msra.gmra.mxu0 %vm494_vm5, %v2674_v43  ;;  %2465 = vmatprep.mubr.msk.f32.mxu1 %vm494_vm5, %v2680_v44 }
 0x35d   : > { %2448 = vmatprep.mubr.msk.f32.mxu0 %vm494_vm5, %v2680_v44 }
 0x35f   : > { %2466 = vmatmul.mubr.msk.f32.gmra.mxu1 %vm494_vm5, %v2693_v45 }
 0x360   : > { %2449 = vmatmul.mubr.msk.f32.gmra.mxu0 %vm494_vm5, %v2693_v45 }
 0x41b   : > { %v2464_v27 = vpop.f32.mrf.mxu1 }
 0x41c   : > { %v2015_v38 = vadd.f32 %v2464_v27, %v2724_v47  ;;  %v2447_v5 = vpop.f32.mrf.mxu0 }
 0x41d   : > { %v1822_v10 = vadd.f32 %v2447_v5, %v2724_v47  ;;  %v2009_v43 = vpop.f32.mrf.mxu1 }
 0x41e   : > { %v2033_v39 = vmul.f32 0.1, %v2015_v38  ;;  %v2010_v4 = vadd.f32 %v2009_v43, %v2722_v46  ;;  %v1816_v11 = vpop.f32.mrf.mxu0  ;;  %vm2029_vm13 = vcmp.gt.f32.partialorder %v2015_v38, 0.0 }
 0x41f   : > { %vm1836_vm14 = vcmp.gt.f32.partialorder %v1822_v10, 0.0  ;;  %v1840_v44 = vmul.f32 0.1, %v1822_v10  ;;  %v1817_v8 = vadd.f32 %v1816_v11, %v2722_v46  ;;  %v2467_v9 = vpop.f32.mrf.mxu1 }
 0x420   : > { %v2032_v12 = vmul.f32 0.1, %v2010_v4  ;;  %v2025_v45 = vadd.f32 %v2467_v9, %v2728_v52  ;;  %v2450_v14 = vpop.f32.mrf.mxu0  ;;  %v2037_v18 = vsel %vm2029_vm13, %v2015_v38, %v2033_v39  ;;  %vm2028_vm0 = vcmp.gt.f32.partialorder %v2010_v4, 0.0 }
 0x421   : > { %v1844_v16 = vsel %vm1836_vm14, %v1822_v10, %v1840_v44  ;;  %vm1835_vm15 = vcmp.gt.f32.partialorder %v1817_v8, 0.0  ;;  %v1839_v17 = vmul.f32 0.1, %v1817_v8  ;;  %v1832_v47 = vadd.f32 %v2450_v14, %v2728_v52  ;;  %v2019_v15 = vpop.f32.mrf.mxu1 }
 0x422   : > { %v1848_v19 = vmax.f32 %v1655_v21, %v1844_v16  ;;  %v2035_v28 = vmul.f32 0.1, %v2025_v45  ;;  %v1826_v29 = vpop.f32.mrf.mxu0  ;;  %v2020_v32 = vadd.f32 %v2019_v15, %v2740_v7  ;;  %vm2031_vm2 = vcmp.gt.f32.partialorder %v2025_v45, 0.0 }
 0x423   : > { %v1843_v46 = vsel %vm1835_vm15, %v1817_v8, %v1839_v17  ;;  %vm1838_vm1 = vcmp.gt.f32.partialorder %v1832_v47, 0.0  ;;  %v1842_v30 = vmul.f32 0.1, %v1832_v47  ;;  %v1827_v52 = vadd.f32 %v1826_v29, %v2740_v7 }
 0x424   : > { %v2041_v33 = vmax.f32 %v1848_v19, %v2037_v18  ;;  %v1847_v35 = vmax.f32 %v1654_v24, %v1843_v46  ;;  %v2036_v61 = vsel %vm2028_vm0, %v2010_v4, %v2032_v12  ;;  %v2034_v1 = vmul.f32 0.1, %v2020_v32 }
 0x425   : > { %v1846_v62 = vsel %vm1838_vm1, %v1832_v47, %v1842_v30  ;;  %vm1837_vm3 = vcmp.gt.f32.partialorder %v1827_v52, 0.0  ;;  %v1841_v42 = vmul.f32 0.1, %v1827_v52  ;;  %v2039_v48 = vsel %vm2031_vm2, %v2025_v45, %v2035_v28 }
 0x426   : > { %2045 = vst.msk [vmem:[%s354_s28 + $0x8] sm:$0xff] %vm494_vm5, %v2041_v33  ;;  %v2040_v40 = vmax.f32 %v1847_v35, %v2036_v61  ;;  %v1850_v41 = vmax.f32 %v1657_v3, %v1846_v62  ;;  %vm2030_vm4 = vcmp.gt.f32.partialorder %v2020_v32, 0.0 }
 0x427   : > { %v1845_v6 = vsel %vm1837_vm3, %v1827_v52, %v1841_v42  ;;  %v2038_v20 = vsel %vm2030_vm4, %v2020_v32, %v2034_v1 }
 0x428   : > { %2044 = vst.msk [vmem:[%s354_s28] sm:$0xff] %vm494_vm5, %v2040_v40  ;;  %v2043_v13 = vmax.f32 %v1850_v41, %v2039_v48  ;;  %v1849_v23 = vmax.f32 %v1656_v50, %v1845_v6 }
 0x42a   : > { %2047 = vst.msk [vmem:[%s354_s28 + $0x18] sm:$0xff] %vm494_vm5, %v2043_v13  ;;  %v2042_v7 = vmax.f32 %v1849_v23, %v2038_v20 }
 0x42c   : > { %2046 = vst.msk [vmem:[%s354_s28 + $0x10] sm:$0xff] %vm494_vm5, %v2042_v7 }
 0x42d PF: > { %s17_s26 = sadd.s32 1, %s2518_s26   ;;  %s2983_s24 = smov %s2514_s25 }
 0x42e   : > { %p14_p5 = scmp.ge.s32.totalorder %s17_s26, 4   ;;  %s2984_s25 = smov %s2986_s27 }
 0x430   :  { %16 = sbr.rel (!%p14_p5) target bundleno = 2 (0x2), region = 84 }

</bundles_post_ra>
